<compile_context>
chip_gen: v7x
topology: tpu7x:2x2x1
jax: 0.10.0
libtpu: 0.0.40
codegen_flags: <defaults>
</compile_context>

<pallas_src>
import jax
import jax.numpy as jnp
from jax.experimental import pallas as pl
from jax.experimental.pallas import tpu as pltpu

LANE = 128


def _round_up(x, m):
    return ((x + m - 1) // m) * m


def make_mlp_kernel(num_layers):
    """Kernel body: num_layers x (MXU matmul + bias), ReLU after all but the last."""

    def kernel(*refs):
        # refs: x, (W, b) per layer, out
        out_ref = refs[-1]
        h = refs[0][...]                          # (TM, F) bf16
        idx = 1
        for li in range(num_layers):
            w = refs[idx][...]                    # (K_p, N_p) bf16
            b = refs[idx + 1][...]                # (1, N_p)  f32
            idx += 2
            acc = jnp.dot(h, w, preferred_element_type=jnp.float32) + b
            if li < num_layers - 1:
                acc = jnp.maximum(acc, 0.0)       # ReLU (Dropout = identity in eval)
                h = acc.astype(jnp.bfloat16)      # bf16 only at the MXU inputs
            else:
                out_ref[...] = acc                # lane-dense f32 store

    return kernel


def fold_and_pad_params(params, lane=LANE):
    """Fold embedding + eval-mode BN into the Linears; pad lane dims to `lane`.

    Returns list of (W_bf16 (K_p, N_p), b_f32 (1, N_p)). First layer's K = num_features.
    """
    tables = params["tables"]                               # (F, 2, E)
    F, _, E = tables.shape
    e0_flat = tables[:, 0, :].reshape(1, F * E)             # (1, F*E)
    ediff = tables[:, 1, :] - tables[:, 0, :]               # (F, E)

    # BatchNorm1d (eval) fold: (h@W + b)*scale + shift == h@(W*scale) + (b*scale + shift)
    folded = []
    for (w, b, scale, shift) in params["hidden"]:
        folded.append((w * scale[None, :], b * scale + shift))
    w_out, b_out = params["out"]
    folded.append((w_out, b_out))

    # Binary-embedding fold into the first Linear:
    #   emb(x)[:, f*E+e] = e0[f,e] + x[:,f]*ediff[f,e]  (affine in x in {0,1})
    #   emb(x) @ W0 + b0 == x @ W0_eff + b0_eff
    w0, b0 = folded[0]
    d0 = w0.shape[1]
    w0_eff = jnp.einsum("fe,feh->fh", ediff, w0.reshape(F, E, d0))   # (F, d0)
    b0_eff = (e0_flat @ w0)[0] + b0
    folded[0] = (w0_eff, b0_eff)

    # Zero-pad each layer's output dim to a multiple of `lane`, and the next layer's
    # input rows to match.  Padded columns produce exact zeros through bias/ReLU.
    padded = []
    prev_extra = 0
    for (w, b) in folded:
        din, dout = w.shape
        dout_p = _round_up(dout, lane)
        w_p = jnp.pad(w, ((0, prev_extra), (0, dout_p - dout)))
        b_p = jnp.pad(b, (0, dout_p - dout)).reshape(1, dout_p)
        padded.append((w_p.astype(jnp.bfloat16), b_p.astype(jnp.float32)))
        prev_extra = dout_p - dout
    return padded


def mlp_forward(x_int, params, *, max_tile_m=512):
    layers = fold_and_pad_params(params)
    num_layers = len(layers)
    F = params["tables"].shape[0]
    out_size = params["out"][0].shape[1]
    out_p = layers[-1][0].shape[1]
    B = x_int.shape[0]

    # Batch tiling: TM multiple of 16 (bf16 sublane packing), as large as reasonable.
    TM = min(max_tile_m, _round_up(B, 16))
    B_pad = _round_up(B, TM)

    x = x_int.astype(jnp.bfloat16)                  # {0,1} exact in bf16; halves x HBM traffic
    if B_pad != B:
        x = jnp.pad(x, ((0, B_pad - B), (0, 0)))

    operands = [x]
    in_specs = [pl.BlockSpec((TM, F), lambda i: (i, 0))]
    for (w, b) in layers:
        operands += [w, b]
        # Constant index_map -> weights/biases stay VMEM-resident across grid steps.
        in_specs += [pl.BlockSpec(w.shape, lambda i: (0, 0)),
                     pl.BlockSpec(b.shape, lambda i: (0, 0))]

    grid = (pl.cdiv(B_pad, TM),)

    # Explicit VMEM budget: params + double-buffered x/out blocks + intermediates,
    # with 2x headroom, capped well under v7x's 64 MiB physical VMEM.
    param_bytes = sum(int(op.size) * op.dtype.itemsize for op in operands[1:])
    max_width = max(max(w.shape[1] for (w, _) in layers), F)
    act_bytes = 6 * TM * max_width * 4
    io_bytes = 2 * (TM * F * 2) + 2 * (TM * out_p * 4)
    vmem_limit = int(min(max(2 * (param_bytes + act_bytes + io_bytes), 8 << 20), 48 << 20))

    out = pl.pallas_call(
        make_mlp_kernel(num_layers),
        out_shape=jax.ShapeDtypeStruct((B_pad, out_p), jnp.float32),
        grid=grid,
        in_specs=in_specs,
        out_specs=pl.BlockSpec((TM, out_p), lambda i: (i, 0)),
        compiler_params=pltpu.CompilerParams(
            dimension_semantics=("parallel",),      # shard batch grid across TCs (v7x)
            vmem_limit_bytes=vmem_limit,
        ),
    )(*operands)

    return out[:B, :out_size]


# ----------------------------- references & init -----------------------------

def mlp_reference(x_int, params):
    """Faithful f32 eval-mode forward mirroring the PyTorch module."""
    tables = params["tables"]
    F, _, E = tables.shape
    embeds = [tables[i][x_int[:, i]] for i in range(F)]            # list of (B, E)
    h = jnp.concatenate(embeds, axis=-1)
    for (w, b, scale, shift) in params["hidden"]:
        h = (h @ w + b) * scale + shift
        h = jnp.maximum(h, 0.0)
    w_out, b_out = params["out"]
    return h @ w_out + b_out


def mlp_reference_folded(x_int, params):
    """Plain-JAX mirror of the exact in-kernel math (same folding, bf16 MXU inputs)."""
    layers = fold_and_pad_params(params)
    out_size = params["out"][0].shape[1]
    h = x_int.astype(jnp.bfloat16)
    acc = None
    for i, (w, b) in enumerate(layers):
        acc = jnp.dot(h, w, preferred_element_type=jnp.float32) + b
        if i < len(layers) - 1:
            h = jnp.maximum(acc, 0.0).astype(jnp.bfloat16)
    return acc[:, :out_size]


def init_params(key, num_features, embed_size, hidden_dims, out_size):
    dims = [num_features * embed_size] + list(hidden_dims)
    keys = jax.random.split(key, 2 + 4 * len(hidden_dims) + 2)
    k = iter(keys)

    tables = jax.random.normal(next(k), (num_features, 2, embed_size), jnp.float32)

    hidden = []
    eps = 1e-5
    for din, dout in zip(dims, dims[1:]):
        w = jax.random.normal(next(k), (din, dout), jnp.float32) * (1.0 / jnp.sqrt(din))
        b = jax.random.normal(next(k), (dout,), jnp.float32) * 0.1
        # BatchNorm1d eval-mode params folded to per-channel scale/shift.
        gamma = 1.0 + 0.1 * jax.random.normal(next(k), (dout,), jnp.float32)
        beta = 0.1 * jax.random.normal(next(k), (dout,), jnp.float32)
        running_mean = jnp.zeros((dout,), jnp.float32)
        running_var = jnp.ones((dout,), jnp.float32)
        scale = gamma / jnp.sqrt(running_var + eps)
        shift = beta - running_mean * scale
        hidden.append((w, b, scale, shift))

    din = dims[-1]
    w_out = jax.random.normal(next(k), (din, out_size), jnp.float32) * (1.0 / jnp.sqrt(din))
    b_out = jax.random.normal(next(k), (out_size,), jnp.float32) * 0.1

    return {"tables": tables, "hidden": hidden, "out": (w_out, b_out)}


if __name__ == "__main__":
    # config_mlp_params
    num_features = 8
    embed_size = 4
    hidden_dims = [32, 16]
    out_size = 4
    batch = 8

    key = jax.random.PRNGKey(0)
    k_params, k_x = jax.random.split(key)
    params = init_params(k_params, num_features, embed_size, hidden_dims, out_size)

    # X: (batch, num_features) binary indices, as in nn.Embedding(2, ...)
    x = jax.random.randint(k_x, (batch, num_features), 0, 2, dtype=jnp.int32)

    out = mlp_forward(x, params)
    out = jax.block_until_ready(out)
    assert out.shape == (batch, out_size)

    # Tight check vs a plain-JAX mirror of the exact in-kernel math (bf16 MXU inputs).
    ref_folded = mlp_reference_folded(x, params)
    assert jnp.allclose(out, ref_folded, atol=2e-3, rtol=2e-3), "mismatch vs folded bf16 reference"

    # Loose check vs the faithful f32 eval-mode forward (bf16 weights -> ~1e-2 tolerance).
    ref_f32 = mlp_reference(x, params)
    assert jnp.allclose(out, ref_f32, atol=1e-1, rtol=1e-1), "mismatch vs f32 reference"

    print("KERNEL_OK")
</pallas_src>

<mosaic_0001>
module attributes {stable_mosaic.version = 11 : i64} {
  func.func @kernel(%arg0: i32, %arg1: memref<16x8xbf16, #tpu.memory_space<vmem>>, %arg2: memref<8x128xbf16, #tpu.memory_space<vmem>>, %arg3: memref<1x128xf32, #tpu.memory_space<vmem>>, %arg4: memref<128x128xbf16, #tpu.memory_space<vmem>>, %arg5: memref<1x128xf32, #tpu.memory_space<vmem>>, %arg6: memref<128x128xbf16, #tpu.memory_space<vmem>>, %arg7: memref<1x128xf32, #tpu.memory_space<vmem>>, %arg8: memref<16x128xf32, #tpu.memory_space<vmem>>) attributes {dimension_semantics = [#tpu.dimension_semantics<parallel>], iteration_bounds = array<i64: 1>, scalar_prefetch = 0 : i64, scratch_operands = 0 : i64, tpu.core_type = #tpu.core_type<tc>, window_params = [{transform_indices = @transform_0, window_bounds = array<i64: 16, 8>}, {pipeline_mode = #tpu.pipeline_mode<synchronous>, transform_indices = @transform_1, window_bounds = array<i64: 8, 128>}, {pipeline_mode = #tpu.pipeline_mode<synchronous>, transform_indices = @transform_2, window_bounds = array<i64: 1, 128>}, {pipeline_mode = #tpu.pipeline_mode<synchronous>, transform_indices = @transform_3, window_bounds = array<i64: 128, 128>}, {pipeline_mode = #tpu.pipeline_mode<synchronous>, transform_indices = @transform_4, window_bounds = array<i64: 1, 128>}, {pipeline_mode = #tpu.pipeline_mode<synchronous>, transform_indices = @transform_5, window_bounds = array<i64: 128, 128>}, {pipeline_mode = #tpu.pipeline_mode<synchronous>, transform_indices = @transform_6, window_bounds = array<i64: 1, 128>}, {transform_indices = @transform_7, window_bounds = array<i64: 16, 128>}]} {
    %c0 = arith.constant 0 : index
    %c0_0 = arith.constant 0 : index
    %0 = vector.load %arg1[%c0, %c0_0] : memref<16x8xbf16, #tpu.memory_space<vmem>>, vector<16x8xbf16>
    %c0_1 = arith.constant 0 : index
    %c0_2 = arith.constant 0 : index
    %1 = vector.load %arg2[%c0_1, %c0_2] : memref<8x128xbf16, #tpu.memory_space<vmem>>, vector<8x128xbf16>
    %c0_3 = arith.constant 0 : index
    %c0_4 = arith.constant 0 : index
    %2 = vector.load %arg3[%c0_3, %c0_4] : memref<1x128xf32, #tpu.memory_space<vmem>>, vector<1x128xf32>
    %cst = arith.constant dense<0.000000e+00> : vector<16x128xf32>
    %3 = tpu.matmul %0, %1, %cst {dimension_numbers = #tpu.dot_dimension_numbers<[1], [0], [0], [1], [0, 0, 1, 1], [], []>} : vector<16x8xbf16>, vector<8x128xbf16>, vector<16x128xf32> -> vector<16x128xf32>
    %4 = vector.broadcast %2 : vector<1x128xf32> to vector<16x128xf32>
    %5 = arith.addf %3, %4 : vector<16x128xf32>
    %cst_5 = arith.constant 0.000000e+00 : f32
    %6 = vector.broadcast %cst_5 : f32 to vector<16x128xf32>
    %7 = arith.maximumf %5, %6 : vector<16x128xf32>
    %8 = arith.truncf %7 : vector<16x128xf32> to vector<16x128xbf16>
    %c0_6 = arith.constant 0 : index
    %c0_7 = arith.constant 0 : index
    %9 = vector.load %arg4[%c0_6, %c0_7] : memref<128x128xbf16, #tpu.memory_space<vmem>>, vector<128x128xbf16>
    %c0_8 = arith.constant 0 : index
    %c0_9 = arith.constant 0 : index
    %10 = vector.load %arg5[%c0_8, %c0_9] : memref<1x128xf32, #tpu.memory_space<vmem>>, vector<1x128xf32>
    %cst_10 = arith.constant dense<0.000000e+00> : vector<16x128xf32>
    %11 = tpu.matmul %8, %9, %cst_10 {dimension_numbers = #tpu.dot_dimension_numbers<[1], [0], [0], [1], [0, 0, 1, 1], [], []>} : vector<16x128xbf16>, vector<128x128xbf16>, vector<16x128xf32> -> vector<16x128xf32>
    %12 = vector.broadcast %10 : vector<1x128xf32> to vector<16x128xf32>
    %13 = arith.addf %11, %12 : vector<16x128xf32>
    %cst_11 = arith.constant 0.000000e+00 : f32
    %14 = vector.broadcast %cst_11 : f32 to vector<16x128xf32>
    %15 = arith.maximumf %13, %14 : vector<16x128xf32>
    %16 = arith.truncf %15 : vector<16x128xf32> to vector<16x128xbf16>
    %c0_12 = arith.constant 0 : index
    %c0_13 = arith.constant 0 : index
    %17 = vector.load %arg6[%c0_12, %c0_13] : memref<128x128xbf16, #tpu.memory_space<vmem>>, vector<128x128xbf16>
    %c0_14 = arith.constant 0 : index
    %c0_15 = arith.constant 0 : index
    %18 = vector.load %arg7[%c0_14, %c0_15] : memref<1x128xf32, #tpu.memory_space<vmem>>, vector<1x128xf32>
    %cst_16 = arith.constant dense<0.000000e+00> : vector<16x128xf32>
    %19 = tpu.matmul %16, %17, %cst_16 {dimension_numbers = #tpu.dot_dimension_numbers<[1], [0], [0], [1], [0, 0, 1, 1], [], []>} : vector<16x128xbf16>, vector<128x128xbf16>, vector<16x128xf32> -> vector<16x128xf32>
    %20 = vector.broadcast %18 : vector<1x128xf32> to vector<16x128xf32>
    %21 = arith.addf %19, %20 : vector<16x128xf32>
    %c0_17 = arith.constant 0 : index
    %c0_18 = arith.constant 0 : index
    %22 = vector.load %arg8[%c0_17, %c0_18] : memref<16x128xf32, #tpu.memory_space<vmem>>, vector<16x128xf32>
    tpu.vector_store %arg8[%c0_17, %c0_18], %21 {strides = array<i32>} : memref<16x128xf32, #tpu.memory_space<vmem>>, vector<16x128xf32>,
    return
  }
  func.func @transform_0(%arg0: i32) -> (i32, i32) {
    %c0_i32 = arith.constant 0 : i32
    %c0_i32_0 = arith.constant 0 : i32
    return %arg0, %c0_i32 : i32, i32
  }
  func.func @transform_1(%arg0: i32) -> (i32, i32) {
    %c0_i32 = arith.constant 0 : i32
    %c0_i32_0 = arith.constant 0 : i32
    %c0_i32_1 = arith.constant 0 : i32
    return %c0_i32, %c0_i32_0 : i32, i32
  }
  func.func @transform_2(%arg0: i32) -> (i32, i32) {
    %c0_i32 = arith.constant 0 : i32
    %c0_i32_0 = arith.constant 0 : i32
    %c0_i32_1 = arith.constant 0 : i32
    return %c0_i32, %c0_i32_0 : i32, i32
  }
  func.func @transform_3(%arg0: i32) -> (i32, i32) {
    %c0_i32 = arith.constant 0 : i32
    %c0_i32_0 = arith.constant 0 : i32
    %c0_i32_1 = arith.constant 0 : i32
    return %c0_i32, %c0_i32_0 : i32, i32
  }
  func.func @transform_4(%arg0: i32) -> (i32, i32) {
    %c0_i32 = arith.constant 0 : i32
    %c0_i32_0 = arith.constant 0 : i32
    %c0_i32_1 = arith.constant 0 : i32
    return %c0_i32, %c0_i32_0 : i32, i32
  }
  func.func @transform_5(%arg0: i32) -> (i32, i32) {
    %c0_i32 = arith.constant 0 : i32
    %c0_i32_0 = arith.constant 0 : i32
    %c0_i32_1 = arith.constant 0 : i32
    return %c0_i32, %c0_i32_0 : i32, i32
  }
  func.func @transform_6(%arg0: i32) -> (i32, i32) {
    %c0_i32 = arith.constant 0 : i32
    %c0_i32_0 = arith.constant 0 : i32
    %c0_i32_1 = arith.constant 0 : i32
    return %c0_i32, %c0_i32_0 : i32, i32
  }
  func.func @transform_7(%arg0: i32) -> (i32, i32) {
    %c0_i32 = arith.constant 0 : i32
    %c0_i32_0 = arith.constant 0 : i32
    return %arg0, %c0_i32 : i32, i32
  }
}

</mosaic_0001>

<bundles_post_ra>
// kernel: tpu_custom_call.1
= control target key start
LH: loop header
LB: loop body
LE: loop exit
PB: predicated region body
PF: predicated region fallthrough
CT: control target
= control target key end

     0   :  { %12 = vsyncpa [#allocation3], 0  ;;  %s678_s0 = inlined_call_operand.vmem [shape: bf16[16,8], index: 0, kind: input, shape index: {}]   ;;  %s679_s1 = inlined_call_operand.vmem [shape: bf16[8,128], index: 1, kind: input, shape index: {}]   ;;  %s680_s2 = inlined_call_operand.vmem [shape: f32[1,128], index: 2, kind: input, shape index: {}]   ;;  %s681_s3 = inlined_call_operand.hbm [shape: bf16[128,128], index: 3, kind: input, shape index: {}]   ;;  %s682_s4 = inlined_call_operand.vmem [shape: f32[1,128], index: 4, kind: input, shape index: {}]   ;;  %s683_s5 = inlined_call_operand.hbm [shape: bf16[128,128], index: 5, kind: input, shape index: {}]   ;;  %s684_s6 = inlined_call_operand.vmem [shape: f32[1,128], index: 6, kind: input, shape index: {}]   ;;  %s685_s7 = inlined_call_operand.hbm [shape: f32[16,128], index: 7, kind: output, shape index: {}]  }
   0x1   :  { %13 = vsyncpa [#allocation6], 0 }
   0x2   :  { %14 = vsyncpa [#allocation4], 0  ;;  %s555_s24 = smov [#allocation2]   ;;  %s483_s28 = scalar_lea.hbm %s681_s3, 1024 }
   0x3   :  { %s26_s25 = sshll.u32 %s555_s24, 4  ;;  %p484_p0 = scmp.ne.s32.totalorder %s681_s3, %s483_s28  ;;  %s27_s25 = int_to_ptr.vmem [resolvable:$true] %s26_s25 }
   0x4   :  { %p487_p1 = scmp.lt.u32.totalorder %s483_s28, %s681_s3 }
   0x6   :  { %p489_p2 = pnand %p487_p1, %p484_p0 }
   0x8   :  { %492 = shalt.err (!%p489_p2)
}
   0x9   :  { %s493_s10 = scalar_lea.vmem %s27_s25, 1024  ;;  %p498_p4 = scmp.lt.s32.totalorder %s27_s25, %s27_s25 }
   0xa   :  { %p494_p3 = scmp.ne.s32.totalorder %s27_s25, %s493_s10  ;;  %p499_p5 = scmp.lt.s32.totalorder %s493_s10, %s493_s10 }
   0xc   :  { %p500_p6 = por %p499_p5, %p498_p4 }
   0xe   :  { %p501_p7 = pnand %p500_p6, %p494_p3 }
  0x10   :  { %504 = shalt.err (!%p501_p7)
}
  0x11   :  { %s556_s11 = smov 64   ;;  %s557_s12 = smov 4  }
  0x12   :  { %32 = dma.hbm_to_vmem [thread:$0]  %s681_s3, 1024, %s27_s25, [#allocation3], %s556_s11, %s556_s11, %s557_s12  }
  0x13   :  { %s558_s15 = smov [#allocation5]   ;;  %s505_s19 = scalar_lea.hbm %s683_s5, 1024 }
  0x14   :  { %s40_s16 = sshll.u32 %s558_s15, 4  ;;  %p506_p8 = scmp.ne.s32.totalorder %s683_s5, %s505_s19  ;;  %s41_s16 = int_to_ptr.vmem [resolvable:$true] %s40_s16 }
  0x15   :  { %p509_p9 = scmp.lt.u32.totalorder %s505_s19, %s683_s5 }
  0x17   :  { %p511_p10 = pnand %p509_p9, %p506_p8 }
  0x19   :  { %514 = shalt.err (!%p511_p10)
}
  0x1a   :  { %s515_s24 = scalar_lea.vmem %s41_s16, 1024  ;;  %p520_p12 = scmp.lt.s32.totalorder %s41_s16, %s41_s16 }
  0x1b   :  { %p516_p11 = scmp.ne.s32.totalorder %s41_s16, %s515_s24  ;;  %p521_p13 = scmp.lt.s32.totalorder %s515_s24, %s515_s24 }
  0x1d   :  { %p522_p0 = por %p521_p13, %p520_p12 }
  0x1f   :  { %p523_p1 = pnand %p522_p0, %p516_p11 }
  0x21   :  { %526 = shalt.err (!%p523_p1)
}
  0x22   :  { %46 = dma.hbm_to_vmem [thread:$0]  %s683_s5, 1024, %s41_s16, [#allocation6], %s556_s11, %s556_s11, %s557_s12  }
  0x23   :  { %549 = dma.done.wait [#allocation3], 1024  }
  0x24   :  { %550 = vsyncadd [#allocation3], 4294966272 }
  0x25   :  { %551 = dma.done.wait [#allocation6], 1024  }
  0x26   :  { %552 = vsyncadd [#allocation6], 4294966272  ;;  %v559_v0 = vmov 0.0   ;;  %vm560_vm0 = vmmov 0   ;;  %vm75_vm1 = vcmask 1043456   ;;  %v466_v3 = vld [vmem:[%s678_s0] sm:$0xff]  }
  0x27   :  { %411 = vmatprep.subr.bf16.mxu0 %v559_v0  ;;  %413 = vmatprep.mubr.msk.bf16.mxu0 %vm560_vm0, %v559_v0  ;;  %v58_v1 = vld [vmem:[%s679_s1] sm:$0xf]  ;;  %vm71_vm2 = vcmask 64512   ;;  %v468_v5 = vld [vmem:[#allocation2 + $0x8] sm:$0xff]   ;;  %v469_v6 = vld [vmem:[#allocation2 + $0x10] sm:$0xff]   ;;  %s561_s9 = smov [#allocation7]  }
  0x28   :  { %417 = vmatprep.subr.bf16.mxu1 %v559_v0  ;;  %433 = vmatprep.mubr.msk.bf16.mxu1 %vm560_vm0, %v559_v0  ;;  %v77_v2 = vsel %vm75_vm1, %v58_v1, 0  ;;  %v467_v4 = vld [vmem:[#allocation2] sm:$0xff]   ;;  %v470_v7 = vld [vmem:[#allocation2 + $0x18] sm:$0xff]   ;;  %v472_v9 = vld [vmem:[#allocation2 + $0x28] sm:$0xff]   ;;  %s357_s10 = sshll.u32 %s561_s9, 4  ;;  %s358_s10 = int_to_ptr.vmem [resolvable:$true] %s357_s10 }
  0x29   :  { %412 = vmatpush3.bf16.msra.mxu0 %v77_v2  ;;  %418 = vmatpush3.bf16.msra.mxu1 %v467_v4  ;;  %v471_v8 = vld [vmem:[#allocation2 + $0x20] sm:$0xff]   ;;  %v473_v10 = vld [vmem:[#allocation2 + $0x30] sm:$0xff]   ;;  %v474_v11 = vld [vmem:[#allocation2 + $0x38] sm:$0xff]   ;;  %p532_p3 = scmp.lt.s32.totalorder %s358_s10, %s358_s10 }
  0x2a   :  { %437 = vmatprep.subr.bf16.mxu0 %v559_v0  ;;  %419 = vmatprep.subr.bf16.mxu1 %v559_v0  ;;  %v475_v12 = vld [vmem:[#allocation5] sm:$0xff]   ;;  %v476_v13 = vld [vmem:[#allocation5 + $0x8] sm:$0xff]   ;;  %v477_v14 = vld [vmem:[#allocation5 + $0x10] sm:$0xff]  }
  0x2b   :  { %v478_v15 = vld [vmem:[#allocation5 + $0x18] sm:$0xff]   ;;  %v479_v16 = vld [vmem:[#allocation5 + $0x20] sm:$0xff]   ;;  %v480_v17 = vld [vmem:[#allocation5 + $0x28] sm:$0xff]  }
  0x2c   :  { %414 = vmatmul.mubr.msk.bf16.vlgmr.msra.gmra.mrb[0].mxu0 %vm71_vm2, %v466_v3  ;;  %v370_v18 = vld [vmem:[%s680_s2] ss:$0 sm:$0xff]  ;;  %v481_v28 = vld [vmem:[#allocation5 + $0x30] sm:$0xff]   ;;  %v482_v29 = vld [vmem:[#allocation5 + $0x38] sm:$0xff]  }
  0x2d   :  { %453 = vmatprep.mubr.msk.bf16.mxu0 %vm560_vm0, %v559_v0  ;;  %420 = vmatpush3.bf16.msra.mxu1 %v468_v5  ;;  %v373_v30 = vld [vmem:[%s682_s4] ss:$0 sm:$0xff]  ;;  %s527_s4 = scalar_lea.vmem %s358_s10, 256 }
  0x2e   :  { %421 = vmatprep.subr.bf16.mxu1 %v559_v0  ;;  %438 = vmatpush3.bf16.msra.mxu0 %v475_v12  ;;  %v382_v40 = vld [vmem:[%s684_s6] ss:$0 sm:$0xff]  ;;  %p528_p2 = scmp.ne.s32.totalorder %s358_s10, %s527_s4  ;;  %p533_p4 = scmp.lt.s32.totalorder %s527_s4, %s527_s4 }
  0x2f   :  { %439 = vmatprep.subr.bf16.mxu0 %v559_v0 }
  0x30   :  { %p534_p5 = por %p533_p4, %p532_p3 }
  0x31   :  { %422 = vmatpush3.bf16.msra.mxu1 %v469_v6 }
  0x32   :  { %423 = vmatprep.subr.bf16.mxu1 %v559_v0  ;;  %440 = vmatpush3.bf16.msra.mxu0 %v476_v13  ;;  %p535_p6 = pnand %p534_p5, %p528_p2 }
  0x33   :  { %441 = vmatprep.subr.bf16.mxu0 %v559_v0 }
  0x35   :  { %424 = vmatpush3.bf16.msra.mxu1 %v470_v7 }
  0x36   :  { %425 = vmatprep.subr.bf16.mxu1 %v559_v0  ;;  %442 = vmatpush3.bf16.msra.mxu0 %v477_v14 }
  0x37   :  { %443 = vmatprep.subr.bf16.mxu0 %v559_v0 }
  0x39   :  { %426 = vmatpush3.bf16.msra.mxu1 %v471_v8 }
  0x3a   :  { %427 = vmatprep.subr.bf16.mxu1 %v559_v0  ;;  %444 = vmatpush3.bf16.msra.mxu0 %v478_v15 }
  0x3b   :  { %445 = vmatprep.subr.bf16.mxu0 %v559_v0 }
  0x3d   :  { %428 = vmatpush3.bf16.msra.mxu1 %v472_v9 }
  0x3e   :  { %429 = vmatprep.subr.bf16.mxu1 %v559_v0  ;;  %446 = vmatpush3.bf16.msra.mxu0 %v479_v16 }
  0x3f   :  { %447 = vmatprep.subr.bf16.mxu0 %v559_v0 }
  0x41   :  { %430 = vmatpush3.bf16.msra.mxu1 %v473_v10 }
  0x42   :  { %431 = vmatprep.subr.bf16.mxu1 %v559_v0  ;;  %448 = vmatpush3.bf16.msra.mxu0 %v480_v17 }
  0x43   :  { %449 = vmatprep.subr.bf16.mxu0 %v559_v0 }
  0x45   :  { %432 = vmatpush3.bf16.msra.mxu1 %v474_v11 }
  0x46   :  { %450 = vmatpush3.bf16.msra.mxu0 %v481_v28 }
  0x47   :  { %451 = vmatprep.subr.bf16.mxu0 %v559_v0 }
  0x4a   :  { %452 = vmatpush3.bf16.msra.mxu0 %v482_v29 }
  0xff   :  { %v113_v19 = vpop.f32.mrb[0].mxu0 }
 0x100   :  { %v114_v20 = vadd.f32 %v370_v18, %v113_v19  ;;  %v415_v21 = vpop.f32.mrb[1].mxu0 }
 0x101   :  { %v116_v22 = vpop.f32.mrb[2].mxu0 }
 0x102   :  { %v117_v23 = vadd.f32 %v370_v18, %v116_v22  ;;  %v416_v24 = vpop.f32.mrb[3].mxu0  ;;  %v120_v25 = vmax.f32 %v114_v20, 0.0 }
 0x104   :  { %v121_v26 = vmax.f32 %v117_v23, 0.0 }
 0x106   :  { %v122_v27 = vpack.c.bf16 %v121_v26, %v120_v25 }
 0x108   :  { %434 = vmatmul.mubr.bf16.vlgmr.msra.gmra.mrb[0].mxu1 %v122_v27 }
 0x1db   :  { %v228_v31 = vpop.f32.mrb[0].mxu1 }
 0x1dc   :  { %v229_v32 = vadd.f32 %v373_v30, %v228_v31  ;;  %v435_v33 = vpop.f32.mrb[1].mxu1 }
 0x1dd   :  { %v231_v34 = vpop.f32.mrb[2].mxu1 }
 0x1de   :  { %v232_v35 = vadd.f32 %v373_v30, %v231_v34  ;;  %v436_v36 = vpop.f32.mrb[3].mxu1  ;;  %v235_v37 = vmax.f32 %v229_v32, 0.0 }
 0x1e0   :  { %v236_v38 = vmax.f32 %v232_v35, 0.0 }
 0x1e2   :  { %v237_v39 = vpack.c.bf16 %v236_v38, %v235_v37 }
 0x1e4   :  { %454 = vmatmul.mubr.bf16.vlgmr.msra.gmra.mrb[4].mxu0 %v237_v39 }
 0x2b7   :  { %v343_v41 = vpop.f32.mrb[4].mxu0 }
 0x2b8   :  { %v344_v42 = vadd.f32 %v382_v40, %v343_v41  ;;  %v455_v43 = vpop.f32.mrb[5].mxu0 }
 0x2b9   :  { %v346_v44 = vpop.f32.mrb[6].mxu0 }
 0x2ba   :  { %350 = vst [vmem:[#allocation7] sm:$0xff] %v344_v42  ;;  %v347_v45 = vadd.f32 %v382_v40, %v346_v44  ;;  %v456_v46 = vpop.f32.mrb[7].mxu0 }
 0x2bc   :  { %351 = vst [vmem:[#allocation7 + $0x8] sm:$0xff] %v347_v45 }
 0x2bd   :  { %538 = shalt.err (!%p535_p6)
}
 0x2be   :  { %s539_s12 = scalar_lea.hbm %s685_s7, 256 }
 0x2bf   :  { %p540_p7 = scmp.ne.s32.totalorder %s685_s7, %s539_s12  ;;  %p543_p8 = scmp.lt.u32.totalorder %s539_s12, %s685_s7 }
 0x2c1   :  { %p545_p9 = pnand %p543_p8, %p540_p7 }
 0x2c3   :  { %548 = shalt.err (!%p545_p9)
}
 0x2c4   :  { %s562_s17 = smov 128   ;;  %s563_s18 = smov 8  }
 0x2c5   :  { %363 = dma.vmem_to_hbm [thread:$0]  %s358_s10, 256, %s685_s7, [#allocation4], %s562_s17, %s562_s17, %s563_s18  }
 0x2c6   :  { %553 = dma.done.wait [#allocation4], 256  }
 0x2c7   :  { %554 = vsyncadd [#allocation4], 4294967040 }
 0x2c8   :  { %367 = vsyncpa [#allocation3], 1 }
 0x2c9   :  { %368 = vsyncpa [#allocation6], 1 }
 0x2ca   :  { %369 = vsyncpa [#allocation4], 1 }

</bundles_post_ra>
